<compile_context>
chip_gen: v6e
topology: v6e:2x2x1
jax: 0.10.0
libtpu: 0.0.40
codegen_flags: <defaults>
</compile_context>

<pallas_src>
import numpy as np
import jax
import jax.numpy as jnp
from jax.experimental import pallas as pl
from jax.experimental.pallas import tpu as pltpu


def _relpos_bias_kernel(idx_ref, wt_ref, out_ref):
    # idx_ref: [1, N]   int32  -- flattened (TILE_I, J) chunk; left-pad cols hold -1
    # wt_ref : [H, TV]  f32    -- V-tile of the transposed, zero-padded weight
    # out_ref: [H, N]   f32    -- lane-dense output slab tile (N = TILE_I * J)
    k = pl.program_id(1)
    tv = wt_ref.shape[1]
    n = out_ref.shape[1]

    # Shift indices into this V-tile's local coordinates (cheap [1, N] int op),
    # then build the one-hot with a single [TV, N] compare.  The -1 pad
    # sentinel stays negative for every V-tile, so padded columns stay 0.
    local = idx_ref[...] - k * tv                                 # [1, N]
    iota_v = jax.lax.broadcasted_iota(jnp.int32, (tv, n), 0)      # [TV, N]
    onehot = (iota_v == local).astype(jnp.float32)

    # One MXU push per (I-tile, V-tile); exact gather (each column selects at
    # most one weight row).
    contrib = jnp.dot(wt_ref[...], onehot, preferred_element_type=jnp.float32)

    @pl.when(k == 0)
    def _():
        out_ref[...] = contrib            # first V-tile: overwrite (no init pass)

    @pl.when(k > 0)
    def _():
        out_ref[...] += contrib           # accumulate in the resident out block


def _round_up(x, m):
    return (x + m - 1) // m * m


def _choose_tiles(I, J, V_pad, onehot_budget_bytes=8 << 20):
    """Pick (tile_i, tile_v):
       - per-tile column count tile_i*J is lane-dense (multiple of 128) or full,
       - the one-hot [tile_v, tile_i*J] f32 temp fits a VMEM budget,
       - prefer a single reduction step (tile_v = V_pad), then the largest
         tile_i, and >= 2 grid steps over I so the pipeline / megacore has work.
    """
    i_cands = [t for t in range(1, I + 1)
               if I % t == 0 and ((t * J) % 128 == 0 or t == I)]
    v_cands = [v for v in range(128, V_pad + 1, 128) if V_pad % v == 0]
    for tv in sorted(v_cands, reverse=True):          # fewest accumulate steps first
        fitting = [ti for ti in i_cands if tv * ti * J * 4 <= onehot_budget_bytes]
        if fitting:
            multi = [ti for ti in fitting if I // ti >= 2]
            return max(multi if multi else fitting), tv
    # Degenerate fallback (huge J): still correct, may exceed the soft budget.
    return min(i_cands), min(v_cands)


def init_relpos_bias_2d(size, heads, key):
    """Deterministic parameter / buffer construction (mirrors __init__)."""
    V = (2 * size - 1) ** 2
    # nn.Embedding default init: N(0, 1)
    weight = jax.random.normal(key, (V, heads), dtype=jnp.float32)

    ar = np.arange(size)
    hh, ww = np.meshgrid(ar, ar, indexing="ij")        # torch.meshgrid default ('ij')
    pos = np.stack([hh, ww], axis=-1).reshape(-1, 2)   # [size*size, 2]
    rel = pos[:, None, :] - pos[None, :, :] + (size - 1)
    pos_indices = rel[..., 0] * (2 * size - 1) + rel[..., 1]     # [size^2, size^2]
    return weight, jnp.asarray(pos_indices, dtype=jnp.int32)


def rel_pos_bias_2d(qk_shape, weight, pos_indices, *, onehot_budget_bytes=8 << 20):
    """Pallas implementation of RelPosBias2d.forward (only qk's shape is used)."""
    i, j = int(qk_shape[-2]), int(qk_shape[-1])
    V, H = weight.shape
    I, J = i, j

    # ---- wrapper-side layout plumbing (free; outside the kernel) ----
    idx = pos_indices[:i, :j - 1].astype(jnp.int32)                      # [I, J-1]
    pad = J - idx.shape[-1]                                              # left zero-pad width
    idx_padded = jnp.pad(idx, ((0, 0), (pad, 0)), constant_values=-1)    # [I, J], -1 sentinel
    idx_flat = idx_padded.reshape(1, I * J)                              # lane-major flat layout

    V_pad = _round_up(V, 128)                       # aligned MXU contraction / sublanes
    wt = jnp.pad(weight.T, ((0, 0), (0, V_pad - V)))                     # [H, V_pad]

    tile_i, tile_v = _choose_tiles(I, J, V_pad, onehot_budget_bytes)
    n_tile = tile_i * J
    grid = (I // tile_i, V_pad // tile_v)

    slab = pl.pallas_call(
        _relpos_bias_kernel,
        grid=grid,
        out_shape=jax.ShapeDtypeStruct((H, I * J), jnp.float32),
        in_specs=[
            pl.BlockSpec((1, n_tile), lambda t, k: (0, t)),    # flattened index chunk
            pl.BlockSpec((H, tile_v), lambda t, k: (0, k)),    # V-tile of the weight
        ],
        out_specs=pl.BlockSpec((H, n_tile), lambda t, k: (0, t)),   # resident across k
        compiler_params=pltpu.CompilerParams(
            dimension_semantics=("parallel", "arbitrary"),
            vmem_limit_bytes=32 * 1024 * 1024,
        ),
    )(idx_flat, wt)

    return slab.reshape(H, I, J)


def rel_pos_bias_2d_ref(qk_shape, weight, pos_indices):
    """Pure-JAX reference, mirroring the PyTorch forward exactly."""
    i, j = qk_shape[-2], qk_shape[-1]
    bias = jnp.take(weight, pos_indices[:i, :j - 1], axis=0)   # [I, J-1, H]
    bias = jnp.transpose(bias, (2, 0, 1))                      # [H, I, J-1]
    pad = j - bias.shape[-1]
    return jnp.pad(bias, ((0, 0), (0, 0), (pad, 0)))


if __name__ == "__main__":
    size, heads, batch = 4, 8, 2
    n = size * size                                   # seq length of the 2D grid

    key = jax.random.PRNGKey(0)
    k_w, k_qk = jax.random.split(key)
    weight, pos_indices = init_relpos_bias_2d(size, heads, k_w)

    # layout: [B, H, I, J] — only its shape matters to the module's forward.
    qk = jax.random.normal(k_qk, (batch, heads, n, n), dtype=jnp.float32)

    bias = rel_pos_bias_2d(qk.shape, weight, pos_indices)
    bias = jax.block_until_ready(bias)

    ref = rel_pos_bias_2d_ref(qk.shape, weight, pos_indices)
    np.testing.assert_allclose(np.asarray(bias), np.asarray(ref), rtol=1e-5, atol=1e-5)
    assert bias.shape == (heads, n, n)

    print("KERNEL_OK")
</pallas_src>

<mosaic_0001>
module attributes {stable_mosaic.version = 11 : i64} {
  func.func @_relpos_bias_kernel(%arg0: i32, %arg1: i32, %arg2: memref<1x128xi32, #tpu.memory_space<vmem>>, %arg3: memref<8x128xf32, #tpu.memory_space<vmem>>, %arg4: memref<8x128xf32, #tpu.memory_space<vmem>>) attributes {dimension_semantics = [#tpu.dimension_semantics<parallel>, #tpu.dimension_semantics<arbitrary>], iteration_bounds = array<i64: 2, 1>, scalar_prefetch = 0 : i64, scratch_operands = 0 : i64, tpu.core_type = #tpu.core_type<tc>, window_params = [{transform_indices = @transform_0, window_bounds = array<i64: 1, 128>}, {transform_indices = @transform_1, window_bounds = array<i64: 8, 128>}, {transform_indices = @transform_2, window_bounds = array<i64: 8, 128>}]} {
    %c0 = arith.constant 0 : index
    %c0_0 = arith.constant 0 : index
    %0 = vector.load %arg2[%c0, %c0_0] : memref<1x128xi32, #tpu.memory_space<vmem>>, vector<1x128xi32>
    %c128_i32 = arith.constant 128 : i32
    %1 = arith.muli %arg1, %c128_i32 : i32
    %2 = vector.broadcast %1 : i32 to vector<1x128xi32>
    %3 = arith.subi %0, %2 : vector<1x128xi32>
    %4 = tpu.iota {dimensions = array<i32: 0>} : vector<128x128xi32>
    %5 = vector.broadcast %3 : vector<1x128xi32> to vector<128x128xi32>
    %6 = arith.cmpi eq, %4, %5 : vector<128x128xi32>
    %7 = arith.extui %6 : vector<128x128xi1> to vector<128x128xi32>
    %8 = arith.sitofp %7 : vector<128x128xi32> to vector<128x128xf32>
    %c0_1 = arith.constant 0 : index
    %c0_2 = arith.constant 0 : index
    %9 = vector.load %arg3[%c0_1, %c0_2] : memref<8x128xf32, #tpu.memory_space<vmem>>, vector<8x128xf32>
    %cst = arith.constant dense<0.000000e+00> : vector<8x128xf32>
    %10 = tpu.matmul %9, %8, %cst {dimension_numbers = #tpu.dot_dimension_numbers<[1], [0], [0], [1], [0, 0, 1, 1], [], []>} : vector<8x128xf32>, vector<128x128xf32>, vector<8x128xf32> -> vector<8x128xf32>
    %c0_i32 = arith.constant 0 : i32
    %11 = arith.cmpi eq, %arg1, %c0_i32 : i32
    %12 = arith.extui %11 : i1 to i32
    %c0_i32_3 = arith.constant 0 : i32
    %13 = arith.cmpi ne, %12, %c0_i32_3 : i32
    scf.if %13 {
      %c0_6 = arith.constant 0 : index
      %c0_7 = arith.constant 0 : index
      %17 = vector.load %arg4[%c0_6, %c0_7] : memref<8x128xf32, #tpu.memory_space<vmem>>, vector<8x128xf32>
      tpu.vector_store %arg4[%c0_6, %c0_7], %10 {strides = array<i32>} : memref<8x128xf32, #tpu.memory_space<vmem>>, vector<8x128xf32>,
    } else {
    }
    %c0_i32_4 = arith.constant 0 : i32
    %14 = arith.cmpi sgt, %arg1, %c0_i32_4 : i32
    %15 = arith.extui %14 : i1 to i32
    %c0_i32_5 = arith.constant 0 : i32
    %16 = arith.cmpi ne, %15, %c0_i32_5 : i32
    scf.if %16 {
      %c0_6 = arith.constant 0 : index
      %c0_7 = arith.constant 0 : index
      %17 = vector.load %arg4[%c0_6, %c0_7] : memref<8x128xf32, #tpu.memory_space<vmem>>, vector<8x128xf32>
      %18 = arith.addf %17, %10 : vector<8x128xf32>
      %c0_8 = arith.constant 0 : index
      %c0_9 = arith.constant 0 : index
      %19 = vector.load %arg4[%c0_8, %c0_9] : memref<8x128xf32, #tpu.memory_space<vmem>>, vector<8x128xf32>
      tpu.vector_store %arg4[%c0_8, %c0_9], %18 {strides = array<i32>} : memref<8x128xf32, #tpu.memory_space<vmem>>, vector<8x128xf32>,
    } else {
    }
    return
  }
  func.func @transform_0(%arg0: i32, %arg1: i32) -> (i32, i32) {
    %c0_i32 = arith.constant 0 : i32
    %c0_i32_0 = arith.constant 0 : i32
    return %c0_i32, %arg0 : i32, i32
  }
  func.func @transform_1(%arg0: i32, %arg1: i32) -> (i32, i32) {
    %c0_i32 = arith.constant 0 : i32
    %c0_i32_0 = arith.constant 0 : i32
    return %c0_i32, %arg1 : i32, i32
  }
  func.func @transform_2(%arg0: i32, %arg1: i32) -> (i32, i32) {
    %c0_i32 = arith.constant 0 : i32
    %c0_i32_0 = arith.constant 0 : i32
    return %c0_i32, %arg0 : i32, i32
  }
}

</mosaic_0001>

<bundles_post_ra>
// kernel: tpu_custom_call.1
= control target key start
LH: loop header
LB: loop body
LE: loop exit
PB: predicated region body
PF: predicated region fallthrough
CT: control target
= control target key end

     0   :  { %7 = vsyncpa [#allocation3], 0  ;;  %s989_s0 = inlined_call_operand.hbm [shape: s32[1,256], index: 0, kind: input, shape index: {}]   ;;  %s990_s1 = inlined_call_operand.hbm [shape: f32[8,128], index: 1, kind: input, shape index: {}]   ;;  %s991_s2 = inlined_call_operand.hbm [shape: f32[8,256], index: 2, kind: output, shape index: {}]  }
   0x1   :  { %9 = vsyncpa [#allocation3 + $0x1], 0 }
   0x2   :  { %10 = vsyncpa [#allocation6], 0 }
   0x3   :  { %11 = vsyncpa [#allocation4], 0 }
   0x4   :  { %13 = vsyncpa [#allocation4 + $0x1], 0  ;;  %s780_s9 = smov 0   ;;  %s782_s10 = smov 0  }
   0x5   :  { %s784_s11 = smov 0   ;;  %s786_s12 = smov 0  }
   0x6   :  { %s788_s13 = smov 0   ;;  %s790_s14 = smov 0  }
   0x7 LB: > { %s445_s15 = sadd.s32 4294967295, %s757_s14   ;;  %s446_s16 = sadd.s32 4294967294, %s757_s14   ;;  %s757_s14 = sphi %s790_s14, %s19_s14   ;;  %s753_s13 = sphi %s788_s13, %s1008_s13   ;;  %s749_s12 = sphi %s786_s12, %s1007_s12   ;;  %s745_s11 = sphi %s784_s11, %s1006_s11   ;;  %s741_s10 = sphi %s782_s10, %s1005_s10   ;;  %s737_s9 = sphi %s780_s9, %s1004_s9  }
   0x8   : > { %p51_p0 = scmp.ne.s32.totalorder %s741_s10, %s737_s9  ;;  %p814_p1 = scmp.eq.s32.totalorder %s445_s15, 0 }
   0x9   : > { %p818_p2 = scmp.eq.s32.totalorder %s445_s15, 1  ;;  %p107_p3 = scmp.eq.s32.totalorder %s446_s16, 1 }
   0xa   : > { %p824_p4 = por %p814_p1, %p51_p0  ;;  %p447_p5 = scmp.ge.s32.totalorder %s757_s14, 1 }
   0xb   : > { %p829_p6 = por %p107_p3, %p51_p0  ;;  %p114_p7 = scmp.lt.s32.totalorder %s757_s14, 3 }
   0xc   : > { %s995_s19 = scalar_select %p824_p4, 1, 0 }
   0xd   : > { %s996_s20 = scalar_select %p829_p6, 1, 0 }
   0xe   : > { %p834_p8 = pnand %p447_p5, %p114_p7  ;;  %s759_s22 = smov [#allocation5]  }
   0xf   : > { %s129_s23 = sshll.u32 %s759_s22, 4  ;;  %s31_s25 = sadd.s32 1, %s753_s13  ;;  %s130_s23 = int_to_ptr.vmem [resolvable:$true] %s129_s23 }
  0x10   : > { %p551_p10 = pneg %p834_p8  ;;  %s38_s26 = sadd.s32 1, %s745_s11 }
  0x11   : > { %p33_p12 = scmp.ge.s32.totalorder %s31_s25, 2  ;;  %s630_s27 = scalar_lea.vmem %s130_s23, 128 }
  0x12   : > { %p843_p11 = pnand %p551_p10, %p814_p1  ;;  %p631_p0 = scmp.ne.s32.totalorder %s130_s23, %s630_s27 }
  0x13   : > { %p638_p7 = scmp.lt.s32.totalorder %s130_s23, %s130_s23  ;;  %p639_p6 = scmp.lt.s32.totalorder %s630_s27, %s630_s27 }
  0x14   : > { %p621_p13 = pneg %p843_p11 }
  0x15   : > { %p640_p9 = por %p639_p6, %p638_p7 }
  0x16   : > { %p633_p3 = pnand %p631_p0, %p621_p13 }
  0x18   : > { %p634_p5 = pneg %p633_p3 }
  0x1a   : > { %p641_p4 = pnand %p640_p9, %p634_p5 }
  0x1c   : > { %644 = shalt.err (!%p641_p4)
}
  0x1d   : > { %554 = dma.hbm_to_vmem [thread:$0]  (!%p843_p11), %s990_s1, 128, %s130_s23, [#allocation6]  }
  0x1e   : > { %s1010_s25 = smov (%p33_p12, %s31_s25), 0  ;;  %p45_p6 = scmp.ne.s32.totalorder %s745_s11, %s741_s10 }
  0x1f   : > { %p46_p4 = scmp.eq.s32.totalorder %s757_s14, 0  ;;  %s35_s30 = ssub.s32 %s753_s13, %s1010_s25 }
  0x20   : > { %p564_p9 = scmp.lt.s32.totalorder %s757_s14, 2  ;;  %p36_p10 = scmp.eq.s32.totalorder %s35_s30, 0 }
  0x21   : > { %p47_p13 = por %p46_p4, %p45_p6  ;;  %p866_p0 = por %p818_p2, %p45_p6 }
  0x22   : > { %s140_s4 = sand.u32 1, %s745_s11   ;;  %s450_s6 = sshll.u32 %s753_s13, 4 }
  0x23   : > { %s872_s5 = scalar_select %p36_p10, %s745_s11, %s38_s26  }
  0x24   : > { %s143_s7 = scalar_lea.vmem [#allocation2], %s140_s4  ;;  %s148_s22 = scalar_lea.hbm %s989_s0, %s450_s6 }
  0x25   : > { %s150_s8 = sshll.u32 %s143_s7, 4  ;;  %p878_p11 = pnand %p564_p9, %p47_p13  ;;  %s151_s8 = int_to_ptr.vmem [resolvable:$true] %s150_s8 }
  0x26   : > { %s141_s18 = scalar_lea.sflag [#allocation3], %s140_s4  ;;  %s658_s24 = scalar_lea.vmem %s151_s8, 16 }
  0x27   : > { %p647_p2 = pneg %p878_p11  ;;  %p659_p12 = scmp.ne.s32.totalorder %s151_s8, %s658_s24 }
  0x28   : > { %s760_s26 = smov [#allocation2]  }
  0x29   : > { %p661_p3 = pnand %p659_p12, %p647_p2  ;;  %s663_s27 = sshll.u32 %s760_s26, 4  ;;  %s664_s27 = int_to_ptr.vmem [resolvable:$false] %s663_s27 }
  0x2a   : > { %s665_s28 = scalar_lea.vmem %s664_s27, 32  ;;  %p666_p7 = scmp.lt.s32.totalorder %s151_s8, %s664_s27 }
  0x2b   : > { %p662_p5 = pneg %p661_p3  ;;  %p667_p6 = scmp.lt.s32.totalorder %s665_s28, %s658_s24 }
  0x2d   : > { %p668_p4 = por %p667_p6, %p666_p7 }
  0x2f   : > { %p669_p10 = pnand %p668_p4, %p662_p5 }
  0x31   : > { %672 = shalt.err (!%p669_p10)
}
  0x32   : > { %558 = dma.hbm_to_vmem [thread:$0]  (!%p878_p11), %s148_s22, 16, %s151_s8, %s141_s18  }
  0x33   : > { %159 = sbr.rel (%p834_p8) target bundleno = 304 (0x130), region = 28  ;;  %s889_s29 = sand.u32 (!%p834_p8), 1, %s741_s10  }
  0x34   : > { %s162_s30 = scalar_lea.sflag (!%p834_p8), [#allocation3], %s889_s29  ;;  %s164_s4 = scalar_lea.vmem (!%p834_p8), [#allocation2], %s889_s29 }
  0x35   : > { %p1001_p9 = scmp.ne.s32.totalorder (!%p834_p8), %s995_s19, 0 }
  0x38   : > { %724 = dma.done.wait (%p1001_p9), %s162_s30, 16  }
  0x39   : > { %726 = vsyncadd (%p1001_p9), %s162_s30, 4294967280 }
  0x3a   : > { %728 = dma.done.wait (%p814_p1), [#allocation6], 128  }
  0x3b   : > { %730 = vsyncadd (%p814_p1), [#allocation6], 4294967168  ;;  %v192_v0 = vlaneseq  ;;  %v761_v1 = vmov 0.0   ;;  %vm762_vm0 = vmmov 0   ;;  %v454_v6 = vld [vmem:[%s164_s4] ss:$0 sm:$0xff] }
  0x3c   : > { %508 = vmatprep.subr.mxu0 %v761_v1  ;;  %540 = vmatprep.mubr.msk.f32.mxu0 %vm762_vm0, %v761_v1  ;;  %v763_v8 = vmov 1.0   ;;  %v261_v20 = vld [vmem:[#allocation5] sm:$0xff]  ;;  %s453_s17 = sshll.u32 %s889_s29, 3  ;;  %s488_s6 = sshll.u32 %s749_s12, 7 }
  0x3d   : > { %v903_v2 = vshrl.u32 %v192_v0, 7  ;;  %s187_s19 = scalar_lea.vmem [#allocation7], %s453_s17  ;;  %s943_s15 = scalar_lea.hbm %s991_s2, %s488_s6 }
  0x3e   : > { %s358_s21 = sshll.u32 %s187_s19, 4  ;;  %s345_s16 = scalar_lea.sflag [#allocation4], %s889_s29  ;;  %s938_s21 = int_to_ptr.vmem [resolvable:$true] %s358_s21 }
  0x3f   : > { %v208_v3 = vadd.s32 120, %v903_v2  ;;  %v207_v4 = vadd.s32 112, %v903_v2  ;;  %v206_v5 = vadd.s32 104, %v903_v2  ;;  %v205_v7 = vadd.s32 96, %v903_v2  ;;  %s673_s22 = scalar_lea.vmem %s938_s21, 128  ;;  %s764_s12 = smov [#allocation7]  }
  0x40   : > { %v204_v9 = vadd.s32 88, %v903_v2  ;;  %v203_v10 = vadd.s32 80, %v903_v2  ;;  %v202_v11 = vadd.s32 72, %v903_v2  ;;  %v201_v12 = vadd.s32 64, %v903_v2  ;;  %p674_p1 = scmp.ne.s32.totalorder %s938_s21, %s673_s22  ;;  %s677_s23 = sshll.u32 %s764_s12, 4  ;;  %s678_s23 = int_to_ptr.vmem [resolvable:$false] %s677_s23 }
  0x41   : > { %vm228_vm1 = vcmp.eq.s32.totalorder %v208_v3, %v454_v6  ;;  %vm227_vm2 = vcmp.eq.s32.totalorder %v207_v4, %v454_v6  ;;  %vm226_vm3 = vcmp.eq.s32.totalorder %v206_v5, %v454_v6  ;;  %vm225_vm4 = vcmp.eq.s32.totalorder %v205_v7, %v454_v6  ;;  %s679_s18 = scalar_lea.vmem %s678_s23, 256  ;;  %p680_p11 = scmp.lt.s32.totalorder %s938_s21, %s678_s23 }
  0x42   : > { %509 = vmatpush3.msk.msra.mxu0 %vm228_vm1, %v763_v8  ;;  %vm224_vm5 = vcmp.eq.s32.totalorder %v204_v9, %v454_v6  ;;  %vm223_vm6 = vcmp.eq.s32.totalorder %v203_v10, %v454_v6  ;;  %vm222_vm7 = vcmp.eq.s32.totalorder %v202_v11, %v454_v6  ;;  %v200_v13 = vadd.s32 56, %v903_v2  ;;  %p675_p8 = pnand %p674_p1, %p866_p0  ;;  %p681_p2 = scmp.lt.s32.totalorder %s679_s18, %s673_s22 }
  0x43   : > { %510 = vmatprep.subr.mxu0 %v761_v1  ;;  %vm221_vm8 = vcmp.eq.s32.totalorder %v201_v12, %v454_v6  ;;  %v199_v14 = vadd.s32 48, %v903_v2  ;;  %v198_v15 = vadd.s32 40, %v903_v2  ;;  %v197_v16 = vadd.s32 32, %v903_v2 }
  0x44   : > { %511 = vmatpush3.msk.msra.mxu0 %vm227_vm2, %v763_v8  ;;  %vm220_vm9 = vcmp.eq.s32.totalorder %v200_v13, %v454_v6  ;;  %v196_v17 = vadd.s32 24, %v903_v2  ;;  %v195_v18 = vadd.s32 16, %v903_v2  ;;  %v194_v19 = vadd.s32 8, %v903_v2  ;;  %p676_p13 = pneg %p675_p8  ;;  %p682_p12 = por %p681_p2, %p680_p11 }
  0x45   : > { %512 = vmatprep.subr.mxu0 %v761_v1  ;;  %vm219_vm10 = vcmp.eq.s32.totalorder %v199_v14, %v454_v6  ;;  %vm218_vm11 = vcmp.eq.s32.totalorder %v198_v15, %v454_v6  ;;  %vm217_vm12 = vcmp.eq.s32.totalorder %v197_v16, %v454_v6  ;;  %vm213_vm0 = vcmp.eq.s32.totalorder %v903_v2, %v454_v6 }
  0x46   : > { %513 = vmatpush3.msk.msra.mxu0 %vm226_vm3, %v763_v8  ;;  %vm216_vm13 = vcmp.eq.s32.totalorder %v196_v17, %v454_v6  ;;  %vm215_vm14 = vcmp.eq.s32.totalorder %v195_v18, %v454_v6  ;;  %vm214_vm15 = vcmp.eq.s32.totalorder %v194_v19, %v454_v6  ;;  %p683_p3 = pnand %p682_p12, %p676_p13 }
  0x47   : > { %514 = vmatprep.subr.mxu0 %v761_v1 }
  0x48   : > { %515 = vmatpush3.msk.msra.mxu0 %vm225_vm4, %v763_v8 }
  0x49   : > { %516 = vmatprep.subr.mxu0 %v761_v1 }
  0x4a   : > { %517 = vmatpush3.msk.msra.mxu0 %vm224_vm5, %v763_v8 }
  0x4b   : > { %518 = vmatprep.subr.mxu0 %v761_v1 }
  0x4c   : > { %519 = vmatpush3.msk.msra.mxu0 %vm223_vm6, %v763_v8 }
  0x4d   : > { %520 = vmatprep.subr.mxu0 %v761_v1 }
  0x4e   : > { %521 = vmatpush3.msk.msra.mxu0 %vm222_vm7, %v763_v8 }
  0x4f   : > { %522 = vmatprep.subr.mxu0 %v761_v1 }
  0x50   : > { %523 = vmatpush3.msk.msra.mxu0 %vm221_vm8, %v763_v8 }
  0x51   : > { %524 = vmatprep.subr.mxu0 %v761_v1 }
  0x52   : > { %525 = vmatpush3.msk.msra.mxu0 %vm220_vm9, %v763_v8 }
  0x53   : > { %526 = vmatprep.subr.mxu0 %v761_v1 }
  0x54   : > { %527 = vmatpush3.msk.msra.mxu0 %vm219_vm10, %v763_v8 }
  0x55   : > { %528 = vmatprep.subr.mxu0 %v761_v1 }
  0x56   : > { %529 = vmatpush3.msk.msra.mxu0 %vm218_vm11, %v763_v8 }
  0x57   : > { %530 = vmatprep.subr.mxu0 %v761_v1 }
  0x58   : > { %531 = vmatpush3.msk.msra.mxu0 %vm217_vm12, %v763_v8 }
  0x59   : > { %532 = vmatprep.subr.mxu0 %v761_v1 }
  0x5a   : > { %533 = vmatpush3.msk.msra.mxu0 %vm216_vm13, %v763_v8 }
  0x5b   : > { %534 = vmatprep.subr.mxu0 %v761_v1 }
  0x5c   : > { %535 = vmatpush3.msk.msra.mxu0 %vm215_vm14, %v763_v8 }
  0x5d   : > { %536 = vmatprep.subr.mxu0 %v761_v1 }
  0x5e   : > { %537 = vmatpush3.msk.msra.mxu0 %vm214_vm15, %v763_v8 }
  0x5f   : > { %538 = vmatprep.subr.mxu0 %v761_v1 }
  0x60   : > { %539 = vmatpush3.msk.msra.mxu0 %vm213_vm0, %v763_v8 }
  0x61   : > { %541 = vmatmul.mubr.f32.vlgmr.msra.gmra.mxu0 %v261_v20 }
 0x121   : > { %v328_v21 = vpop.f32.mrf.mxu0 }
 0x122   : > { %336 = vst [vmem:[%s187_s19] sm:$0xff] %v328_v21 }
 0x123   : > { %v542_v22 = vpop.f32.mrf.mxu0 }
 0x124   : > { %686 = shalt.err (!%p683_p3)
}
 0x125   : > { %s687_s24 = scalar_lea.hbm %s943_s15, 128  ;;  %s691_s28 = scalar_lea.hbm %s991_s2, 256 }
 0x126   : > { %p688_p5 = scmp.ne.s32.totalorder %s943_s15, %s687_s24  ;;  %p692_p4 = scmp.lt.s32.totalorder %s943_s15, %s991_s2 }
 0x127   : > { %p693_p10 = scmp.lt.s32.totalorder %s691_s28, %s687_s24 }
 0x128   : > { %p689_p7 = pnand %p688_p5, %p866_p0 }
 0x129   : > { %p694_p9 = por %p693_p10, %p692_p4 }
 0x12a   : > { %p690_p6 = pneg %p689_p7 }
 0x12c   : > { %p695_p1 = pnand %p694_p9, %p690_p6 }
 0x12e   : > { %698 = shalt.err (!%p695_p1)
}
 0x12f   : > { %549 = dma.vmem_to_hbm [thread:$0]  (%p866_p0), %s938_s21, 128, %s943_s15, %s345_s16  }
 0x130 PF: > { %s370_s4 = sand.u32 1, %s737_s9   ;;  %p1002_p8 = scmp.ne.s32.totalorder %s996_s20, 0 }
 0x131   : > { %p1003_p13 = scmp.ge.s32.totalorder %s757_s14, 2  ;;  %s371_s17 = scalar_lea.sflag [#allocation4], %s370_s4 }
 0x133   : > { %p560_p11 = pnand %p1003_p13, %p1002_p8 }
 0x135   : > { %p561_p2 = pneg %p560_p11 }
 0x137   : > { %732 = dma.done.wait (%p561_p2), %s371_s17, 128  }
 0x138   : > { %734 = vsyncadd (%p561_p2), %s371_s17, 4294967168  ;;  %s19_s14 = sadd.s32 1, %s757_s14   ;;  %s1004_s9 = smov %s741_s10 }
 0x139   : > { %p16_p12 = scmp.ge.s32.totalorder %s19_s14, 4   ;;  %s1005_s10 = smov %s745_s11 }
 0x13a   : > { %s1006_s11 = smov %s872_s5  ;;  %s1007_s12 = smov %s753_s13 }
 0x13b   : > { %s1008_s13 = smov %s1010_s25  ;;  %18 = sbr.rel (!%p16_p12) target bundleno = 7 (0x7), region = 86 }
 0x140   :  { %376 = vsyncpa [#allocation3], 1 }
 0x141   :  { %378 = vsyncpa [#allocation3 + $0x1], 1 }
 0x142   :  { %379 = vsyncpa [#allocation6], 1 }
 0x143   :  { %380 = vsyncpa [#allocation4], 1 }
 0x144   :  { %382 = vsyncpa [#allocation4 + $0x1], 1 }

</bundles_post_ra>
